<compile_context>
chip_gen: v5e
topology: v5e:2x2
jax: 0.10.0
libtpu: 0.0.40
codegen_flags: <defaults>
</compile_context>

<pallas_src>
import functools

import jax
import jax.numpy as jnp
from jax import lax
from jax.experimental import pallas as pl
from jax.experimental.pallas import tpu as pltpu

_LANES = 128


def _pointnet_nll_kernel(pred_ref, target_ref, weight_ref, out_ref,
                         num_acc, den_acc, *, strip):
    """One grid step: accumulate weighted-NLL partials for a (tile_rows, 128) slab.

    pred_ref:   (C, tile_rows, 128) log-probs, channels-first, lane-dense   (VMEM)
    target_ref: (tile_rows, 128)    int32 class ids, -1 == padding/ignored  (VMEM)
    weight_ref: (C,)                f32 per-class weights                   (SMEM)
    out_ref:    (1, 1, 128)         f32; lane0 = sum(w*logp), lane1 = sum(w) (VMEM)
    num_acc/den_acc: (strip, 128)   f32 running partials                    (VMEM scratch)
    """
    t = pl.program_id(1)

    @pl.when(t == 0)
    def _init():
        num_acc[...] = jnp.zeros_like(num_acc)
        den_acc[...] = jnp.zeros_like(den_acc)

    num_classes = pred_ref.shape[0]
    tile_rows = target_ref.shape[0]
    n_strips = tile_rows // strip

    def strip_body(s, carry):
        num_run, den_run = carry
        row0 = pl.multiple_of(s * strip, strip)
        tgt = target_ref[pl.ds(row0, strip), :]                     # (strip, 128) i32
        logp_sel = jnp.zeros((strip, _LANES), jnp.float32)
        w_sel = jnp.zeros((strip, _LANES), jnp.float32)
        # Static (unrolled) class loop: classes are mutually exclusive, so selected
        # log-prob and weight are built with where-selects (never 0 * garbage), which
        # also makes out-of-range rows (target == -1) contribute exactly 0.
        for c in range(num_classes):
            m = tgt == c
            p_c = pred_ref[c, pl.ds(row0, strip), :].astype(jnp.float32)
            logp_sel = jnp.where(m, p_c, logp_sel)
            w_sel = jnp.where(m, weight_ref[c], w_sel)              # scalar SMEM read
        return num_run + w_sel * logp_sel, den_run + w_sel

    init = (jnp.zeros((strip, _LANES), jnp.float32),
            jnp.zeros((strip, _LANES), jnp.float32))
    num_run, den_run = lax.fori_loop(0, n_strips, strip_body, init)
    num_acc[...] += num_run
    den_acc[...] += den_run

    @pl.when(t == pl.num_programs(1) - 1)
    def _finalize():
        numer = jnp.sum(num_acc[...])                               # single small reduce
        denom = jnp.sum(den_acc[...])
        lane = lax.broadcasted_iota(jnp.int32, out_ref.shape, 2)
        out_ref[...] = jnp.where(lane == 0, numer,
                                 jnp.where(lane == 1, denom, jnp.float32(0.0)))


def pointnet_loss(pred, target, weight, *, tile_rows=None, split=None,
                  vmem_budget_bytes=20 * 1024 * 1024):
    """pred: (B, N, C) log-probs (f32 or bf16); target: (B, N) int; weight: (C,).

    Returns scalar f32 equal to F.nll_loss(pred.permute(0,2,1), target, weight=weight).
    """
    B, N, C = pred.shape
    P = B * N
    itemsize = jnp.dtype(pred.dtype).itemsize
    sub = 16 if itemsize < 4 else 8           # sublane quantum (16 for sub-32-bit dtypes)

    # ---- generation-aware TensorCore split: 2 only on v7x (2 TCs), else 1 ------------
    if split is None:
        kind = ""
        try:
            kind = jax.devices()[0].device_kind.lower()
        except Exception:
            pass
        split = 2 if "v7" in kind else 1

    # ---- channels-first, lane-dense pred: one transpose copy, minimal/conditional pad
    pred_cf = jnp.transpose(pred.reshape(P, C))                     # (C, P)
    rows = pl.cdiv(P, _LANES)                                       # logical point rows
    rows_pred = pl.cdiv(rows, sub) * sub                            # sublane-aligned rows
    if rows_pred * _LANES != P:                                     # skipped when aligned
        pred_cf = jnp.pad(pred_cf, ((0, 0), (0, rows_pred * _LANES - P)))
    pred_cf = pred_cf.reshape(C, rows_pred, _LANES)

    # ---- tile size: as large as the VMEM budget allows (fits 32 MiB scoped default on
    # every generation, incl. v7x's 64 MiB/TC), capped at 512 rows per step ------------
    if tile_rows is None:
        bytes_per_row_db = 2 * (C * _LANES * itemsize + _LANES * 4)  # dbl-buffered pred+tgt
        tile_rows = int(vmem_budget_bytes // bytes_per_row_db)
        tile_rows = min(tile_rows, 512)
    tile_rows = max(sub, min(int(tile_rows), rows_pred))
    if tile_rows >= 32:
        tile_rows -= tile_rows % 32
    else:
        tile_rows -= tile_rows % sub
    strip = 32 if tile_rows % 32 == 0 else (16 if tile_rows % 16 == 0 else 8)

    # ---- grid geometry; only target (cheap int32) is padded to the full grid extent --
    tiles_needed = pl.cdiv(rows, tile_rows)
    tiles_total = pl.cdiv(tiles_needed, split) * split
    grid_rows = tiles_total * tile_rows

    tgt_flat = target.reshape(P).astype(jnp.int32)
    if grid_rows * _LANES != P:
        tgt_flat = jnp.pad(tgt_flat, (0, grid_rows * _LANES - P), constant_values=-1)
    tgt_2d = tgt_flat.reshape(grid_rows, _LANES)

    weight = weight.astype(jnp.float32)
    max_pred_block = max(pl.cdiv(rows_pred, tile_rows) - 1, 0)

    cost = pl.CostEstimate(flops=int(5 * P * C), transcendentals=0,
                           bytes_accessed=int(P * C * itemsize + P * 4 + C * 4))

    def run(split_, lead_sem):
        tps = tiles_total // split_
        kernel = functools.partial(_pointnet_nll_kernel, strip=strip)
        call = pl.pallas_call(
            kernel,
            out_shape=jax.ShapeDtypeStruct((split_, 1, _LANES), jnp.float32),
            grid_spec=pltpu.PrefetchScalarGridSpec(
                num_scalar_prefetch=0,
                grid=(split_, tps),
                in_specs=[
                    # Trailing tiles may overrun pred; clamp the block index (re-reads the
                    # last in-range block) -- safe because those rows have target == -1.
                    pl.BlockSpec((C, tile_rows, _LANES),
                                 lambda s, t: (0, jnp.minimum(s * tps + t, max_pred_block), 0)),
                    pl.BlockSpec((tile_rows, _LANES),
                                 lambda s, t: (s * tps + t, 0)),
                    pl.BlockSpec(memory_space=pltpu.MemorySpace.SMEM),   # weight: C scalars
                ],
                out_specs=pl.BlockSpec((1, 1, _LANES), lambda s, t: (s, 0, 0)),
                scratch_shapes=[
                    pltpu.VMEM((strip, _LANES), jnp.float32),   # numerator partial
                    pltpu.VMEM((strip, _LANES), jnp.float32),   # denominator partial
                ],
            ),
            compiler_params=pltpu.CompilerParams(
                dimension_semantics=(lead_sem, "arbitrary"),
                vmem_limit_bytes=32 * 1024 * 1024),
            cost_estimate=cost,
        )
        return call(pred_cf, tgt_2d, weight)

    if split > 1:
        lead = getattr(pltpu, "CORE_PARALLEL", "parallel")
        try:
            partials = run(split, lead)
        except Exception:
            partials = run(1, "arbitrary")        # safe single-core fallback
    else:
        partials = run(1, "arbitrary")

    # Combine per-core partial sums; single negate-and-divide at the very end.
    numer = jnp.sum(partials[:, 0, 0])
    denom = jnp.sum(partials[:, 0, 1])
    return -numer / denom


def _reference_loss(pred, target, weight):
    # Pure-JAX reference of the same weighted-mean NLL semantics.
    sel_logp = jnp.take_along_axis(pred.astype(jnp.float32),
                                   target[..., None], axis=-1)[..., 0]   # (B, N)
    sel_w = weight[target]                                               # (B, N)
    return -jnp.sum(sel_w * sel_logp) / jnp.sum(sel_w)


if __name__ == "__main__":
    key = jax.random.PRNGKey(0)
    k1, k2, k3 = jax.random.split(key, 3)

    B, N, C = 2, 200, 8   # batch, points-per-cloud (non-multiple of 128 -> exercises masking), classes

    logits = jax.random.normal(k1, (B, N, C), dtype=jnp.float32)
    pred = jax.nn.log_softmax(logits, axis=-1)                       # log-probs (PointNet output)
    target = jax.random.randint(k2, (B, N), 0, C, dtype=jnp.int32)
    weight = jax.random.uniform(k3, (C,), dtype=jnp.float32, minval=0.5, maxval=1.5)

    loss = jax.block_until_ready(pointnet_loss(pred, target, weight))
    ref = jax.block_until_ready(_reference_loss(pred, target, weight))
    assert jnp.allclose(loss, ref, rtol=1e-5, atol=1e-5), (loss, ref)

    # bf16 activations stream at half the HBM bytes; kernel still accumulates in f32.
    pred_bf16 = pred.astype(jnp.bfloat16)
    loss_bf = jax.block_until_ready(pointnet_loss(pred_bf16, target, weight))
    ref_bf = jax.block_until_ready(_reference_loss(pred_bf16, target, weight))
    assert jnp.allclose(loss_bf, ref_bf, rtol=1e-3, atol=1e-3), (loss_bf, ref_bf)

    print("KERNEL_OK")
</pallas_src>

<mosaic_0001>
module attributes {stable_mosaic.version = 11 : i64} {
  func.func @_pointnet_nll_kernel(%arg0: i32, %arg1: i32, %arg2: memref<8x8x128xf32, #tpu.memory_space<vmem>>, %arg3: memref<8x128xi32, #tpu.memory_space<vmem>>, %arg4: memref<8xf32, #tpu.memory_space<smem>>, %arg5: memref<1x1x128xf32, #tpu.memory_space<vmem>>, %arg6: memref<8x128xf32, #tpu.memory_space<vmem>>, %arg7: memref<8x128xf32, #tpu.memory_space<vmem>>) attributes {dimension_semantics = [#tpu.dimension_semantics<arbitrary>, #tpu.dimension_semantics<arbitrary>], iteration_bounds = array<i64: 1, 1>, scalar_prefetch = 0 : i64, scratch_operands = 2 : i64, tpu.core_type = #tpu.core_type<tc>, window_params = [{transform_indices = @transform_0, window_bounds = array<i64: 8, 8, 128>}, {transform_indices = @transform_1, window_bounds = array<i64: 8, 128>}, {transform_indices = @transform_2, window_bounds = array<i64: 8>}, {transform_indices = @transform_3, window_bounds = array<i64: 1, 1, 128>}]} {
    %c0_i32 = arith.constant 0 : i32
    %0 = arith.cmpi eq, %arg1, %c0_i32 : i32
    %1 = arith.extui %0 : i1 to i32
    %c0_i32_0 = arith.constant 0 : i32
    %2 = arith.cmpi ne, %1, %c0_i32_0 : i32
    scf.if %2 {
      %cst_34 = arith.constant 0.000000e+00 : f32
      %95 = vector.broadcast %cst_34 : f32 to vector<8x128xf32>
      %c0_35 = arith.constant 0 : index
      %c0_36 = arith.constant 0 : index
      %96 = vector.load %arg6[%c0_35, %c0_36] : memref<8x128xf32, #tpu.memory_space<vmem>>, vector<8x128xf32>
      tpu.vector_store %arg6[%c0_35, %c0_36], %95 {strides = array<i32>} : memref<8x128xf32, #tpu.memory_space<vmem>>, vector<8x128xf32>,
      %cst_37 = arith.constant 0.000000e+00 : f32
      %97 = vector.broadcast %cst_37 : f32 to vector<8x128xf32>
      %c0_38 = arith.constant 0 : index
      %c0_39 = arith.constant 0 : index
      %98 = vector.load %arg7[%c0_38, %c0_39] : memref<8x128xf32, #tpu.memory_space<vmem>>, vector<8x128xf32>
      tpu.vector_store %arg7[%c0_38, %c0_39], %97 {strides = array<i32>} : memref<8x128xf32, #tpu.memory_space<vmem>>, vector<8x128xf32>,
    } else {
    }
    %cst = arith.constant 0.000000e+00 : f32
    %3 = vector.broadcast %cst : f32 to vector<8x128xf32>
    %cst_1 = arith.constant 0.000000e+00 : f32
    %4 = vector.broadcast %cst_1 : f32 to vector<8x128xf32>
    %c0_i32_2 = arith.constant 0 : i32
    %c8_i32 = arith.constant 8 : i32
    %5 = arith.muli %c0_i32_2, %c8_i32 : i32
    %6 = tpu.assume_multiple %5, 8 : i32
    %7 = arith.index_cast %6 : i32 to index
    %c0 = arith.constant 0 : index
    %8 = vector.load %arg3[%7, %c0] : memref<8x128xi32, #tpu.memory_space<vmem>>, vector<8x128xi32>
    %cst_3 = arith.constant 0.000000e+00 : f32
    %9 = vector.broadcast %cst_3 : f32 to vector<8x128xf32>
    %cst_4 = arith.constant 0.000000e+00 : f32
    %10 = vector.broadcast %cst_4 : f32 to vector<8x128xf32>
    %c0_i32_5 = arith.constant 0 : i32
    %11 = vector.broadcast %c0_i32_5 : i32 to vector<8x128xi32>
    %12 = arith.cmpi eq, %8, %11 : vector<8x128xi32>
    %c0_6 = arith.constant 0 : index
    %13 = arith.index_cast %6 : i32 to index
    %c0_7 = arith.constant 0 : index
    %14 = vector.load %arg2[%c0_6, %13, %c0_7] : memref<8x8x128xf32, #tpu.memory_space<vmem>>, vector<1x8x128xf32>
    %15 = vector.shape_cast %14 : vector<1x8x128xf32> to vector<8x128xf32>
    %16 = arith.select %12, %15, %9 : vector<8x128xi1>, vector<8x128xf32>
    %c0_8 = arith.constant 0 : index
    %17 = memref.load %arg4[%c0_8] : memref<8xf32, #tpu.memory_space<smem>>
    %18 = vector.broadcast %17 : f32 to vector<8x128xf32>
    %19 = arith.select %12, %18, %10 : vector<8x128xi1>, vector<8x128xf32>
    %c1_i32 = arith.constant 1 : i32
    %20 = vector.broadcast %c1_i32 : i32 to vector<8x128xi32>
    %21 = arith.cmpi eq, %8, %20 : vector<8x128xi32>
    %c1 = arith.constant 1 : index
    %22 = arith.index_cast %6 : i32 to index
    %c0_9 = arith.constant 0 : index
    %23 = vector.load %arg2[%c1, %22, %c0_9] : memref<8x8x128xf32, #tpu.memory_space<vmem>>, vector<1x8x128xf32>
    %24 = vector.shape_cast %23 : vector<1x8x128xf32> to vector<8x128xf32>
    %25 = arith.select %21, %24, %16 : vector<8x128xi1>, vector<8x128xf32>
    %c1_10 = arith.constant 1 : index
    %26 = memref.load %arg4[%c1_10] : memref<8xf32, #tpu.memory_space<smem>>
    %27 = vector.broadcast %26 : f32 to vector<8x128xf32>
    %28 = arith.select %21, %27, %19 : vector<8x128xi1>, vector<8x128xf32>
    %c2_i32 = arith.constant 2 : i32
    %29 = vector.broadcast %c2_i32 : i32 to vector<8x128xi32>
    %30 = arith.cmpi eq, %8, %29 : vector<8x128xi32>
    %c2 = arith.constant 2 : index
    %31 = arith.index_cast %6 : i32 to index
    %c0_11 = arith.constant 0 : index
    %32 = vector.load %arg2[%c2, %31, %c0_11] : memref<8x8x128xf32, #tpu.memory_space<vmem>>, vector<1x8x128xf32>
    %33 = vector.shape_cast %32 : vector<1x8x128xf32> to vector<8x128xf32>
    %34 = arith.select %30, %33, %25 : vector<8x128xi1>, vector<8x128xf32>
    %c2_12 = arith.constant 2 : index
    %35 = memref.load %arg4[%c2_12] : memref<8xf32, #tpu.memory_space<smem>>
    %36 = vector.broadcast %35 : f32 to vector<8x128xf32>
    %37 = arith.select %30, %36, %28 : vector<8x128xi1>, vector<8x128xf32>
    %c3_i32 = arith.constant 3 : i32
    %38 = vector.broadcast %c3_i32 : i32 to vector<8x128xi32>
    %39 = arith.cmpi eq, %8, %38 : vector<8x128xi32>
    %c3 = arith.constant 3 : index
    %40 = arith.index_cast %6 : i32 to index
    %c0_13 = arith.constant 0 : index
    %41 = vector.load %arg2[%c3, %40, %c0_13] : memref<8x8x128xf32, #tpu.memory_space<vmem>>, vector<1x8x128xf32>
    %42 = vector.shape_cast %41 : vector<1x8x128xf32> to vector<8x128xf32>
    %43 = arith.select %39, %42, %34 : vector<8x128xi1>, vector<8x128xf32>
    %c3_14 = arith.constant 3 : index
    %44 = memref.load %arg4[%c3_14] : memref<8xf32, #tpu.memory_space<smem>>
    %45 = vector.broadcast %44 : f32 to vector<8x128xf32>
    %46 = arith.select %39, %45, %37 : vector<8x128xi1>, vector<8x128xf32>
    %c4_i32 = arith.constant 4 : i32
    %47 = vector.broadcast %c4_i32 : i32 to vector<8x128xi32>
    %48 = arith.cmpi eq, %8, %47 : vector<8x128xi32>
    %c4 = arith.constant 4 : index
    %49 = arith.index_cast %6 : i32 to index
    %c0_15 = arith.constant 0 : index
    %50 = vector.load %arg2[%c4, %49, %c0_15] : memref<8x8x128xf32, #tpu.memory_space<vmem>>, vector<1x8x128xf32>
    %51 = vector.shape_cast %50 : vector<1x8x128xf32> to vector<8x128xf32>
    %52 = arith.select %48, %51, %43 : vector<8x128xi1>, vector<8x128xf32>
    %c4_16 = arith.constant 4 : index
    %53 = memref.load %arg4[%c4_16] : memref<8xf32, #tpu.memory_space<smem>>
    %54 = vector.broadcast %53 : f32 to vector<8x128xf32>
    %55 = arith.select %48, %54, %46 : vector<8x128xi1>, vector<8x128xf32>
    %c5_i32 = arith.constant 5 : i32
    %56 = vector.broadcast %c5_i32 : i32 to vector<8x128xi32>
    %57 = arith.cmpi eq, %8, %56 : vector<8x128xi32>
    %c5 = arith.constant 5 : index
    %58 = arith.index_cast %6 : i32 to index
    %c0_17 = arith.constant 0 : index
    %59 = vector.load %arg2[%c5, %58, %c0_17] : memref<8x8x128xf32, #tpu.memory_space<vmem>>, vector<1x8x128xf32>
    %60 = vector.shape_cast %59 : vector<1x8x128xf32> to vector<8x128xf32>
    %61 = arith.select %57, %60, %52 : vector<8x128xi1>, vector<8x128xf32>
    %c5_18 = arith.constant 5 : index
    %62 = memref.load %arg4[%c5_18] : memref<8xf32, #tpu.memory_space<smem>>
    %63 = vector.broadcast %62 : f32 to vector<8x128xf32>
    %64 = arith.select %57, %63, %55 : vector<8x128xi1>, vector<8x128xf32>
    %c6_i32 = arith.constant 6 : i32
    %65 = vector.broadcast %c6_i32 : i32 to vector<8x128xi32>
    %66 = arith.cmpi eq, %8, %65 : vector<8x128xi32>
    %c6 = arith.constant 6 : index
    %67 = arith.index_cast %6 : i32 to index
    %c0_19 = arith.constant 0 : index
    %68 = vector.load %arg2[%c6, %67, %c0_19] : memref<8x8x128xf32, #tpu.memory_space<vmem>>, vector<1x8x128xf32>
    %69 = vector.shape_cast %68 : vector<1x8x128xf32> to vector<8x128xf32>
    %70 = arith.select %66, %69, %61 : vector<8x128xi1>, vector<8x128xf32>
    %c6_20 = arith.constant 6 : index
    %71 = memref.load %arg4[%c6_20] : memref<8xf32, #tpu.memory_space<smem>>
    %72 = vector.broadcast %71 : f32 to vector<8x128xf32>
    %73 = arith.select %66, %72, %64 : vector<8x128xi1>, vector<8x128xf32>
    %c7_i32 = arith.constant 7 : i32
    %74 = vector.broadcast %c7_i32 : i32 to vector<8x128xi32>
    %75 = arith.cmpi eq, %8, %74 : vector<8x128xi32>
    %c7 = arith.constant 7 : index
    %76 = arith.index_cast %6 : i32 to index
    %c0_21 = arith.constant 0 : index
    %77 = vector.load %arg2[%c7, %76, %c0_21] : memref<8x8x128xf32, #tpu.memory_space<vmem>>, vector<1x8x128xf32>
    %78 = vector.shape_cast %77 : vector<1x8x128xf32> to vector<8x128xf32>
    %79 = arith.select %75, %78, %70 : vector<8x128xi1>, vector<8x128xf32>
    %c7_22 = arith.constant 7 : index
    %80 = memref.load %arg4[%c7_22] : memref<8xf32, #tpu.memory_space<smem>>
    %81 = vector.broadcast %80 : f32 to vector<8x128xf32>
    %82 = arith.select %75, %81, %73 : vector<8x128xi1>, vector<8x128xf32>
    %83 = arith.mulf %82, %79 : vector<8x128xf32>
    %84 = arith.addf %3, %83 : vector<8x128xf32>
    %85 = arith.addf %4, %82 : vector<8x128xf32>
    %c1_i32_23 = arith.constant 1 : i32
    %c0_24 = arith.constant 0 : index
    %c0_25 = arith.constant 0 : index
    %86 = vector.load %arg6[%c0_24, %c0_25] : memref<8x128xf32, #tpu.memory_space<vmem>>, vector<8x128xf32>
    %87 = arith.addf %86, %84 : vector<8x128xf32>
    %c0_26 = arith.constant 0 : index
    %c0_27 = arith.constant 0 : index
    %88 = vector.load %arg6[%c0_26, %c0_27] : memref<8x128xf32, #tpu.memory_space<vmem>>, vector<8x128xf32>
    tpu.vector_store %arg6[%c0_26, %c0_27], %87 {strides = array<i32>} : memref<8x128xf32, #tpu.memory_space<vmem>>, vector<8x128xf32>,
    %c0_28 = arith.constant 0 : index
    %c0_29 = arith.constant 0 : index
    %89 = vector.load %arg7[%c0_28, %c0_29] : memref<8x128xf32, #tpu.memory_space<vmem>>, vector<8x128xf32>
    %90 = arith.addf %89, %85 : vector<8x128xf32>
    %c0_30 = arith.constant 0 : index
    %c0_31 = arith.constant 0 : index
    %91 = vector.load %arg7[%c0_30, %c0_31] : memref<8x128xf32, #tpu.memory_space<vmem>>, vector<8x128xf32>
    tpu.vector_store %arg7[%c0_30, %c0_31], %90 {strides = array<i32>} : memref<8x128xf32, #tpu.memory_space<vmem>>, vector<8x128xf32>,
    %c0_i32_32 = arith.constant 0 : i32
    %92 = arith.cmpi eq, %arg1, %c0_i32_32 : i32
    %93 = arith.extui %92 : i1 to i32
    %c0_i32_33 = arith.constant 0 : i32
    %94 = arith.cmpi ne, %93, %c0_i32_33 : i32
    scf.if %94 {
      %c0_34 = arith.constant 0 : index
      %c0_35 = arith.constant 0 : index
      %95 = vector.load %arg6[%c0_34, %c0_35] : memref<8x128xf32, #tpu.memory_space<vmem>>, vector<8x128xf32>
      %96 = vector.shape_cast %95 : vector<8x128xf32> to vector<1x8x128xf32>
      %cst_36 = arith.constant dense<0.000000e+00> : vector<1xf32>
      %97 = vector.multi_reduction <add>, %96, %cst_36 [1, 2] : vector<1x8x128xf32> to vector<1xf32>
      %98 = vector.shape_cast %97 : vector<1xf32> to vector<1x1x1xf32>
      %99 = vector.extract %98[0, 0, 0] : f32 from vector<1x1x1xf32>
      %c0_37 = arith.constant 0 : index
      %c0_38 = arith.constant 0 : index
      %100 = vector.load %arg7[%c0_37, %c0_38] : memref<8x128xf32, #tpu.memory_space<vmem>>, vector<8x128xf32>
      %101 = vector.shape_cast %100 : vector<8x128xf32> to vector<1x8x128xf32>
      %cst_39 = arith.constant dense<0.000000e+00> : vector<1xf32>
      %102 = vector.multi_reduction <add>, %101, %cst_39 [1, 2] : vector<1x8x128xf32> to vector<1xf32>
      %103 = vector.shape_cast %102 : vector<1xf32> to vector<1x1x1xf32>
      %104 = vector.extract %103[0, 0, 0] : f32 from vector<1x1x1xf32>
      %105 = tpu.iota {dimensions = array<i32: 2>} : vector<1x1x128xi32>
      %c0_i32_40 = arith.constant 0 : i32
      %106 = vector.broadcast %c0_i32_40 : i32 to vector<1x1x128xi32>
      %107 = arith.cmpi eq, %105, %106 : vector<1x1x128xi32>
      %c1_i32_41 = arith.constant 1 : i32
      %108 = vector.broadcast %c1_i32_41 : i32 to vector<1x1x128xi32>
      %109 = arith.cmpi eq, %105, %108 : vector<1x1x128xi32>
      %cst_42 = arith.constant 0.000000e+00 : f32
      %110 = vector.broadcast %104 : f32 to vector<1x1x128xf32>
      %111 = vector.broadcast %cst_42 : f32 to vector<1x1x128xf32>
      %112 = arith.select %109, %110, %111 : vector<1x1x128xi1>, vector<1x1x128xf32>
      %113 = vector.broadcast %99 : f32 to vector<1x1x128xf32>
      %114 = arith.select %107, %113, %112 : vector<1x1x128xi1>, vector<1x1x128xf32>
      %c0_43 = arith.constant 0 : index
      %c0_44 = arith.constant 0 : index
      %c0_45 = arith.constant 0 : index
      %115 = vector.load %arg5[%c0_43, %c0_44, %c0_45] : memref<1x1x128xf32, #tpu.memory_space<vmem>>, vector<1x1x128xf32>
      tpu.vector_store %arg5[%c0_43, %c0_44, %c0_45], %114 {strides = array<i32>} : memref<1x1x128xf32, #tpu.memory_space<vmem>>, vector<1x1x128xf32>,
    } else {
    }
    return
  }
  func.func @transform_0(%arg0: i32, %arg1: i32) -> (i32, i32, i32) {
    %c1_i32 = arith.constant 1 : i32
    %0 = arith.muli %arg0, %c1_i32 : i32
    %1 = arith.addi %0, %arg1 : i32
    %c0_i32 = arith.constant 0 : i32
    %2 = arith.minsi %1, %c0_i32 : i32
    %c0_i32_0 = arith.constant 0 : i32
    %c0_i32_1 = arith.constant 0 : i32
    %c0_i32_2 = arith.constant 0 : i32
    return %c0_i32_0, %2, %c0_i32_1 : i32, i32, i32
  }
  func.func @transform_1(%arg0: i32, %arg1: i32) -> (i32, i32) {
    %c1_i32 = arith.constant 1 : i32
    %0 = arith.muli %arg0, %c1_i32 : i32
    %1 = arith.addi %0, %arg1 : i32
    %c0_i32 = arith.constant 0 : i32
    %c0_i32_0 = arith.constant 0 : i32
    return %1, %c0_i32 : i32, i32
  }
  func.func @transform_2(%arg0: i32, %arg1: i32) -> i32 {
    %c0_i32 = arith.constant 0 : i32
    %c0_i32_0 = arith.constant 0 : i32
    return %c0_i32 : i32
  }
  func.func @transform_3(%arg0: i32, %arg1: i32) -> (i32, i32, i32) {
    %c0_i32 = arith.constant 0 : i32
    %c0_i32_0 = arith.constant 0 : i32
    %c0_i32_1 = arith.constant 0 : i32
    return %arg0, %c0_i32, %c0_i32_0 : i32, i32, i32
  }
}

</mosaic_0001>

<bundles_post_ra>
// kernel: tpu_custom_call.1
= control target key start
LH: loop header
LB: loop body
LE: loop exit
PB: predicated region body
PF: predicated region fallthrough
CT: control target
= control target key end

     0   :  { %8 = vsyncpa [#allocation5], 0  ;;  %s369_s0 = inlined_call_operand.hbm [shape: f32[8,8,128], index: 0, kind: input, shape index: {}]   ;;  %s370_s1 = inlined_call_operand.hbm [shape: s32[8,128], index: 1, kind: input, shape index: {}]   ;;  %s371_s2 = inlined_call_operand.vmem [shape: f32[8], index: 2, kind: input, shape index: {}]   ;;  %s372_s3 = inlined_call_operand.hbm [shape: f32[1,1,128], index: 3, kind: output, shape index: {}]  }
   0x1   :  { %9 = vsyncpa [#allocation9], 0 }
   0x2   :  { %10 = vsyncpa [#allocation7], 0 }
   0x3   :  { %11 = vsyncpa [#allocation6], 0  ;;  %s21_s14 = sshll.u32 %s369_s0, 4  ;;  %s317_s15 = smov [#allocation4]   ;;  %s22_s14 = int_to_ptr.hbm [resolvable:$true] %s21_s14 }
   0x4   :  { %s23_s16 = sshll.u32 %s317_s15, 4  ;;  %s38_s19 = sshll.u32 %s370_s1, 4  ;;  %s24_s16 = int_to_ptr.vmem [resolvable:$true] %s23_s16  ;;  %s39_s19 = int_to_ptr.hbm [resolvable:$true] %s38_s19 }
   0x5   :  { %s318_s20 = smov 128   ;;  %s319_s21 = smov 8  }
   0x6   :  { %29 = dma.hbm_to_vmem [thread:$0]  %s22_s14, 1024, %s24_s16, [#allocation5], %s318_s20, %s318_s20, %s319_s21  }
   0x7   :  { %s320_s22 = smov [#allocation8]   ;;  %s49_s26 = sshll.u32 %s371_s2, 4  ;;  %s50_s26 = int_to_ptr.vmem [resolvable:$true] %s49_s26 }
   0x8   :  { %s40_s23 = sshll.u32 %s320_s22, 4  ;;  %s321_s0 = smov [#allocation10]   ;;  %s41_s23 = int_to_ptr.vmem [resolvable:$true] %s40_s23 }
   0x9   :  { %43 = dma.hbm_to_vmem [thread:$0]  %s39_s19, 128, %s41_s23, [#allocation9]  }
   0xa   :  { %52 = dma.vmem_to_smem %s50_s26, 16, %s321_s0, [#allocation7]  }
   0xb   :  { %309 = dma.done.wait [#allocation5], 1024  }
   0xc   :  { %310 = vsyncadd [#allocation5], 4294966272 }
   0xd   :  { %311 = dma.done.wait [#allocation9], 128  }
   0xe   :  { %312 = vsyncadd [#allocation9], 4294967168 }
   0xf   :  { %313 = dma.done.wait [#allocation7], 16  }
  0x10   :  { %314 = vsyncadd [#allocation7], 4294967280 }
  0x11   :  { %65 = sfence }
  0x12   :  { %v76_v0 = vld [vmem:[#allocation8] sm:$0xff]  ;;  %s80_s1 = sld [smem:[#allocation10]]  ;;  %v86_v2 = vld [vmem:[#allocation4 + $0x8] sm:$0xff]  ;;  %v94_v3 = vld [vmem:[#allocation4 + $0x10] sm:$0xff]  ;;  %v171_v48 = vlaneseq  ;;  %s322_s6 = smov [#allocation11]  }
  0x13   :  { %v78_v1 = vld [vmem:[#allocation4] sm:$0xff]  ;;  %vm77_vm0 = vcmp.eq.s32.totalorder %v76_v0, 0  ;;  %vm83_vm1 = vcmp.eq.s32.totalorder %v76_v0, 1  ;;  %s208_s27 = sld [smem:[#allocation10 + $0x1]]  ;;  %vm91_vm2 = vcmp.eq.s32.totalorder %v76_v0, 2  ;;  %vm99_vm3 = vcmp.eq.s32.totalorder %v76_v0, 3 }
  0x14   :  { %v79_v4 = vsel %vm77_vm0, %v78_v1, 0.0  ;;  %s209_s2 = sld [smem:[#allocation10 + $0x2]]  ;;  %v102_v5 = vld [vmem:[#allocation4 + $0x18] sm:$0xff]  ;;  %vm107_vm4 = vcmp.eq.s32.totalorder %v76_v0, 4  ;;  %v110_v7 = vld [vmem:[#allocation4 + $0x20] sm:$0xff]  ;;  %vm115_vm5 = vcmp.eq.s32.totalorder %v76_v0, 5 }
  0x15   :  { %v87_v6 = vsel %vm83_vm1, %v86_v2, %v79_v4  ;;  %s210_s28 = sld [smem:[#allocation10 + $0x3]]  ;;  %v118_v9 = vld [vmem:[#allocation4 + $0x28] sm:$0xff]  ;;  %vm123_vm6 = vcmp.eq.s32.totalorder %v76_v0, 6  ;;  %v126_v13 = vld [vmem:[#allocation4 + $0x30] sm:$0xff]  ;;  %vm131_vm7 = vcmp.eq.s32.totalorder %v76_v0, 7  ;;  %v134_v22 = vld [vmem:[#allocation4 + $0x38] sm:$0xff] }
  0x16   :  { %v95_v8 = vsel %vm91_vm2, %v94_v3, %v87_v6  ;;  %s211_s29 = sld [smem:[#allocation10 + $0x4]]  ;;  %v172_v49 = vand.u32 127, %v171_v48  ;;  %s185_s7 = sshll.u32 %s322_s6, 4  ;;  %s186_s7 = int_to_ptr.vmem [resolvable:$true] %s185_s7 }
  0x17   :  { %v103_v10 = vsel %vm99_vm3, %v102_v5, %v95_v8  ;;  %s212_s30 = sld [smem:[#allocation10 + $0x5]]  ;;  %s187_s11 = sshll.u32 %s372_s3, 4  ;;  %s188_s11 = int_to_ptr.hbm [resolvable:$true] %s187_s11 }
  0x18   :  { %v81_v11 = vstv %s80_s1  ;;  %v111_v12 = vsel %vm107_vm4, %v110_v7, %v103_v10  ;;  %s213_s4 = sld [smem:[#allocation10 + $0x6]]  ;;  %vm174_vm8 = vcmp.eq.s32.totalorder %v172_v49, 1  ;;  %vm173_vm9 = vcmp.eq.s32.totalorder %v172_v49, 0 }
  0x19   :  { %v82_v14 = vsel %vm77_vm0, %v81_v11, 0.0  ;;  %v89_v15 = vstv %s208_s27  ;;  %v119_v16 = vsel %vm115_vm5, %v118_v9, %v111_v12  ;;  %s214_s5 = sld [smem:[#allocation10 + $0x7]] }
  0x1a   :  { %v90_v17 = vsel %vm83_vm1, %v89_v15, %v82_v14  ;;  %v97_v18 = vstv %s209_s2  ;;  %v127_v21 = vsel %vm123_vm6, %v126_v13, %v119_v16 }
  0x1b   :  { %v98_v19 = vsel %vm91_vm2, %v97_v18, %v90_v17  ;;  %v105_v20 = vstv %s210_s28  ;;  %v135_v29 = vsel %vm131_vm7, %v134_v22, %v127_v21 }
  0x1c   :  { %v106_v23 = vsel %vm99_vm3, %v105_v20, %v98_v19  ;;  %v113_v24 = vstv %s211_s29 }
  0x1d   :  { %v114_v25 = vsel %vm107_vm4, %v113_v24, %v106_v23  ;;  %v121_v26 = vstv %s212_s30 }
  0x1e   :  { %v122_v27 = vsel %vm115_vm5, %v121_v26, %v114_v25  ;;  %v129_v28 = vstv %s213_s4 }
  0x1f   :  { %v130_v30 = vsel %vm123_vm6, %v129_v28, %v122_v27  ;;  %v137_v31 = vstv %s214_s5 }
  0x20   :  { %v138_v32 = vsel %vm131_vm7, %v137_v31, %v130_v30 }
  0x21   :  { %v139_v33 = vmul.f32 %v138_v32, %v135_v29 }
  0x23   :  { %152 = vadd.xlane.f32.xlu0 %v139_v33 }
  0x2b   :  { %162 = vadd.xlane.f32.xlu0 %v138_v32 }
  0x96   :  { %v153_v34 = vpop.xlane.xlu0 %152 }
  0x97   :  { %v154_v35 = vrot.slane %v153_v34, 4 }
  0x99   :  { %v155_v36 = vadd.f32 %v154_v35, %v153_v34 }
  0x9b   :  { %v156_v37 = vrot.slane %v155_v36, 2 }
  0x9d   :  { %v157_v38 = vadd.f32 %v156_v37, %v155_v36 }
  0x9e   :  { %v163_v39 = vpop.xlane.xlu0 %162 }
  0x9f   :  { %v164_v40 = vrot.slane %v163_v39, 4  ;;  %v158_v41 = vrot.slane %v157_v38, 1 }
  0xa1   :  { %v165_v42 = vadd.f32 %v164_v40, %v163_v39  ;;  %v159_v43 = vadd.f32 %v158_v41, %v157_v38 }
  0xa3   :  { %v166_v44 = vrot.slane %v165_v42, 2  ;;  %215 = vpush %v159_v43 }
  0xa5   :  { %v167_v45 = vadd.f32 %v166_v44, %v165_v42 }
  0xa7   :  { %v168_v46 = vrot.slane %v167_v45, 1 }
  0xa9   :  { %v169_v47 = vadd.f32 %v168_v46, %v167_v45 }
  0xab   :  { %217 = vpush %v169_v47 }
  0xd4   :  { %s216_s8 = spop %215 }
  0xd5   :  { %v177_v51 = vstv %s216_s8 }
  0xdc   :  { %s218_s12 = spop %217 }
  0xdd   :  { %v175_v50 = vstv %s218_s12 }
  0xde   :  { %v176_v52 = vsel %vm174_vm8, %v175_v50, 0.0 }
  0xdf   :  { %v178_v53 = vsel %vm173_vm9, %v177_v51, %v176_v52 }
  0xe0   :  { %179 = vst [vmem:[#allocation11] sm:$0x1] %v178_v53 }
  0xe1   :  { %190 = dma.vmem_to_hbm [thread:$0]  %s186_s7, 16, %s188_s11, [#allocation6]  }
  0xe2   :  { %315 = dma.done.wait [#allocation6], 16  }
  0xe3   :  { %316 = vsyncadd [#allocation6], 4294967280 }
  0xe4   :  { %195 = vsyncpa [#allocation5], 1 }
  0xe5   :  { %196 = vsyncpa [#allocation9], 1 }
  0xe6   :  { %197 = vsyncpa [#allocation6], 1 }
  0xe7   :  { %198 = vsyncpa [#allocation7], 1 }

</bundles_post_ra>
